<compile_context>
chip_gen: v5e
topology: v5e:2x2
jax: 0.10.0
libtpu: 0.0.40
codegen_flags: <defaults>
</compile_context>

<pallas_src>
import functools

import jax
import jax.numpy as jnp
import numpy as np
from jax.experimental import pallas as pl
from jax.experimental.pallas import tpu as pltpu

N_IN = 4      # n_inputs
N_OUT = 3     # n_outputs
HIDDEN = 32   # hidden width of the concrete psi


def _round_up(v, m):
    return (v + m - 1) // m * m


def _taskmap_kernel(second_order, *refs):
    """Feature-major kernel: all tensors are (features, batch_block)."""
    if second_order:
        (xt_ref, xdt_ref, w1t_ref, w2t_ref, mt_ref, b1c_ref, b2c_ref,
         y_ref, yd_ref, j_ref, jd_ref) = refs
    else:
        (xt_ref, w1t_ref, w2t_ref, mt_ref, b1c_ref, b2c_ref,
         y_ref, j_ref) = refs

    xt = xt_ref[...]        # (d_in, bn)
    w1t = w1t_ref[...]      # (H, d_in)      = W1^T
    w2t = w2t_ref[...]      # (d_out, H)     = W2^T
    mt = mt_ref[...]        # (d_out*d_in,H) : mt[j*d_in+i,k] = W2[k,j]*W1[i,k]
    b1c = b1c_ref[...]      # (H, 1)
    b2c = b2c_ref[...]      # (d_out, 1)

    # psi forward
    h = jnp.dot(w1t, xt, preferred_element_type=jnp.float32) + b1c   # (H, bn)
    a = jnp.tanh(h)                                                  # (H, bn)
    s = 1.0 - a * a                                                  # tanh'(h)

    # y^T = W2^T tanh(h) + b2
    y_ref[...] = jnp.dot(w2t, a, preferred_element_type=jnp.float32) + b2c
    # J^T (flattened rows j*d_in+i):  J[b,j,i] = sum_k s[b,k] W2[k,j] W1[i,k]
    j_ref[...] = jnp.dot(mt, s, preferred_element_type=jnp.float32)

    if second_order:
        xdt = xdt_ref[...]                                            # (d_in, bn)
        hd = jnp.dot(w1t, xdt, preferred_element_type=jnp.float32)    # d/dt h
        sd = s * hd
        t = -2.0 * a * sd                                             # d/dt tanh'(h)
        # yd = J @ xd  (== torch.bmm(xd.unsqueeze(1), J.permute(0,2,1)).squeeze(1))
        yd_ref[...] = jnp.dot(w2t, sd, preferred_element_type=jnp.float32)
        # Jd[b,j,i] = sum_k t[b,k] W2[k,j] W1[i,k]
        jd_ref[...] = jnp.dot(mt, t, preferred_element_type=jnp.float32)


def prepare_taskmap_params(params):
    """Per-parameter-set preprocessing, done once (not per forward call)."""
    w1, b1, w2, b2 = params
    w1 = jnp.asarray(w1, jnp.float32)               # (d_in, H)
    w2 = jnp.asarray(w2, jnp.float32)               # (H, d_out)
    d_in, hidden = w1.shape
    d_out = w2.shape[1]
    w1t = w1.T                                      # (H, d_in)
    w2t = w2.T                                      # (d_out, H)
    # Combined Jacobian matrix: mt[j*d_in+i, k] = W2[k, j] * W1[i, k]
    mt = (w2t[:, None, :] * w1[None, :, :]).reshape(d_out * d_in, hidden)
    b1c = jnp.asarray(b1, jnp.float32).reshape(hidden, 1)
    b2c = jnp.asarray(b2, jnp.float32).reshape(d_out, 1)
    return (w1t, w2t, mt, b1c, b2c)


@functools.partial(jax.jit, static_argnames=("order", "block_n"))
def taskmap_forward(prepared, x, xd=None, order=2, block_n=None):
    """Mirrors TaskMap.forward (eval mode, concrete psi, J_ = J_dot_ = None)."""
    w1t, w2t, mt, b1c, b2c = prepared
    hidden, d_in = w1t.shape
    d_out = w2t.shape[0]
    n = x.shape[0]

    second_order = (order != 1)
    if second_order and xd is None:
        raise ValueError("Taskmap requires xd for the second-order version")

    # Batch tile: multiple of 128 so the lane axis (batch) is always full-width.
    if block_n is None:
        block_n = min(512, _round_up(max(n, 1), 128))
    n_pad = _round_up(n, block_n)
    grid = (n_pad // block_n,)

    # Feature-major, lane-dense layout: (features, batch), batch padded to n_pad.
    xt = jnp.zeros((d_in, n_pad), jnp.float32).at[:, :n].set(
        x.astype(jnp.float32).T)
    operands = [xt]
    if second_order:
        xdt = jnp.zeros((d_in, n_pad), jnp.float32).at[:, :n].set(
            xd.astype(jnp.float32).T)
        operands.append(xdt)
    operands += [w1t, w2t, mt, b1c, b2c]

    def batch_spec(feat):
        # Tile over the batch (lane) axis; feature axis is the full array dim.
        return pl.BlockSpec((feat, block_n), lambda i: (0, i))

    def full_spec(arr):
        # Whole array resident in VMEM across all grid steps (weights/biases).
        return pl.BlockSpec(arr.shape, lambda i: (0, 0))

    in_specs = [batch_spec(d_in)]
    if second_order:
        in_specs.append(batch_spec(d_in))
    in_specs += [full_spec(w1t), full_spec(w2t), full_spec(mt),
                 full_spec(b1c), full_spec(b2c)]

    if second_order:
        out_shape = (
            jax.ShapeDtypeStruct((d_out, n_pad), jnp.float32),          # y^T
            jax.ShapeDtypeStruct((d_out, n_pad), jnp.float32),          # yd^T
            jax.ShapeDtypeStruct((d_out * d_in, n_pad), jnp.float32),   # J^T flat
            jax.ShapeDtypeStruct((d_out * d_in, n_pad), jnp.float32),   # Jd^T flat
        )
        out_specs = (batch_spec(d_out), batch_spec(d_out),
                     batch_spec(d_out * d_in), batch_spec(d_out * d_in))
    else:
        out_shape = (
            jax.ShapeDtypeStruct((d_out, n_pad), jnp.float32),          # y^T
            jax.ShapeDtypeStruct((d_out * d_in, n_pad), jnp.float32),   # J^T flat
        )
        out_specs = (batch_spec(d_out), batch_spec(d_out * d_in))

    outs = pl.pallas_call(
        functools.partial(_taskmap_kernel, second_order),
        grid=grid,
        in_specs=in_specs,
        out_specs=out_specs,
        out_shape=out_shape,
        compiler_params=pltpu.CompilerParams(
            dimension_semantics=("parallel",)),
    )(*operands)

    if second_order:
        y_t, yd_t, j_t, jd_t = outs
        y = y_t[:, :n].T                                   # (n, d_out)
        yd = yd_t[:, :n].T                                 # (n, d_out)
        J = j_t[:, :n].T.reshape(n, d_out, d_in)           # (n, d_out, d_in)
        Jd = jd_t[:, :n].T.reshape(n, d_out, d_in)
        return y, yd, J, Jd
    else:
        y_t, j_t = outs
        y = y_t[:, :n].T
        J = j_t[:, :n].T.reshape(n, d_out, d_in)
        return y, J


if __name__ == "__main__":
    key = jax.random.PRNGKey(0)
    k1, k2, k3, k4, k5, k6 = jax.random.split(key, 6)
    n = 8

    # deterministic parameters of the concrete psi (synthetic, not a checkpoint)
    w1 = jax.random.normal(k3, (N_IN, HIDDEN), jnp.float32) * 0.5
    b1 = jax.random.normal(k4, (HIDDEN,), jnp.float32) * 0.1
    w2 = jax.random.normal(k5, (HIDDEN, N_OUT), jnp.float32) * 0.5
    b2 = jax.random.normal(k6, (N_OUT,), jnp.float32) * 0.1
    params = (w1, b1, w2, b2)
    prepared = prepare_taskmap_params(params)   # hoisted weight preprocessing

    x = jax.random.normal(k1, (n, N_IN), jnp.float32)
    xd = jax.random.normal(k2, (n, N_IN), jnp.float32)

    # second-order forward
    y, yd, J, Jd = taskmap_forward(prepared, x, xd, order=2)
    jax.block_until_ready((y, yd, J, Jd))
    # first-order forward (specialized kernel: no hd/yd/t/Jd work)
    y1, J1 = taskmap_forward(prepared, x, order=1)
    jax.block_until_ready((y1, J1))

    # pure-JAX reference reproducing the torch.autograd semantics
    def psi_single(xs):
        return jnp.tanh(xs @ w1 + b1) @ w2 + b2

    y_ref = jax.vmap(psi_single)(x)
    J_ref = jax.vmap(jax.jacobian(psi_single))(x)
    Jd_ref = jax.vmap(
        lambda xs, xds: jax.jvp(jax.jacobian(psi_single), (xs,), (xds,))[1]
    )(x, xd)
    yd_ref = jnp.einsum('bji,bi->bj', J_ref, xd)

    np.testing.assert_allclose(np.asarray(y), np.asarray(y_ref), rtol=1e-5, atol=1e-5)
    np.testing.assert_allclose(np.asarray(yd), np.asarray(yd_ref), rtol=1e-5, atol=1e-5)
    np.testing.assert_allclose(np.asarray(J), np.asarray(J_ref), rtol=1e-5, atol=1e-5)
    np.testing.assert_allclose(np.asarray(Jd), np.asarray(Jd_ref), rtol=1e-5, atol=1e-5)
    np.testing.assert_allclose(np.asarray(y1), np.asarray(y_ref), rtol=1e-5, atol=1e-5)
    np.testing.assert_allclose(np.asarray(J1), np.asarray(J_ref), rtol=1e-5, atol=1e-5)

    print("KERNEL_OK")
</pallas_src>

<mosaic_0001>
module attributes {stable_mosaic.version = 11 : i64} {
  func.func @_taskmap_kernel(%arg0: i32, %arg1: memref<4x128xf32, #tpu.memory_space<vmem>>, %arg2: memref<4x128xf32, #tpu.memory_space<vmem>>, %arg3: memref<32x4xf32, #tpu.memory_space<vmem>>, %arg4: memref<3x32xf32, #tpu.memory_space<vmem>>, %arg5: memref<12x32xf32, #tpu.memory_space<vmem>>, %arg6: memref<32x1xf32, #tpu.memory_space<vmem>>, %arg7: memref<3x1xf32, #tpu.memory_space<vmem>>, %arg8: memref<3x128xf32, #tpu.memory_space<vmem>>, %arg9: memref<3x128xf32, #tpu.memory_space<vmem>>, %arg10: memref<12x128xf32, #tpu.memory_space<vmem>>, %arg11: memref<12x128xf32, #tpu.memory_space<vmem>>) attributes {dimension_semantics = [#tpu.dimension_semantics<parallel>], iteration_bounds = array<i64: 1>, scalar_prefetch = 0 : i64, scratch_operands = 0 : i64, tpu.core_type = #tpu.core_type<tc>, window_params = [{transform_indices = @transform_0, window_bounds = array<i64: 4, 128>}, {transform_indices = @transform_1, window_bounds = array<i64: 4, 128>}, {pipeline_mode = #tpu.pipeline_mode<synchronous>, transform_indices = @transform_2, window_bounds = array<i64: 32, 4>}, {pipeline_mode = #tpu.pipeline_mode<synchronous>, transform_indices = @transform_3, window_bounds = array<i64: 3, 32>}, {pipeline_mode = #tpu.pipeline_mode<synchronous>, transform_indices = @transform_4, window_bounds = array<i64: 12, 32>}, {pipeline_mode = #tpu.pipeline_mode<synchronous>, transform_indices = @transform_5, window_bounds = array<i64: 32, 1>}, {pipeline_mode = #tpu.pipeline_mode<synchronous>, transform_indices = @transform_6, window_bounds = array<i64: 3, 1>}, {transform_indices = @transform_7, window_bounds = array<i64: 3, 128>}, {transform_indices = @transform_8, window_bounds = array<i64: 3, 128>}, {transform_indices = @transform_9, window_bounds = array<i64: 12, 128>}, {transform_indices = @transform_10, window_bounds = array<i64: 12, 128>}]} {
    %c0 = arith.constant 0 : index
    %c0_0 = arith.constant 0 : index
    %0 = vector.load %arg1[%c0, %c0_0] : memref<4x128xf32, #tpu.memory_space<vmem>>, vector<4x128xf32>
    %c0_1 = arith.constant 0 : index
    %c0_2 = arith.constant 0 : index
    %1 = vector.load %arg3[%c0_1, %c0_2] : memref<32x4xf32, #tpu.memory_space<vmem>>, vector<32x4xf32>
    %c0_3 = arith.constant 0 : index
    %c0_4 = arith.constant 0 : index
    %2 = vector.load %arg4[%c0_3, %c0_4] : memref<3x32xf32, #tpu.memory_space<vmem>>, vector<3x32xf32>
    %c0_5 = arith.constant 0 : index
    %c0_6 = arith.constant 0 : index
    %3 = vector.load %arg5[%c0_5, %c0_6] : memref<12x32xf32, #tpu.memory_space<vmem>>, vector<12x32xf32>
    %c0_7 = arith.constant 0 : index
    %c0_8 = arith.constant 0 : index
    %4 = vector.load %arg6[%c0_7, %c0_8] : memref<32x1xf32, #tpu.memory_space<vmem>>, vector<32x1xf32>
    %c0_9 = arith.constant 0 : index
    %c0_10 = arith.constant 0 : index
    %5 = vector.load %arg7[%c0_9, %c0_10] : memref<3x1xf32, #tpu.memory_space<vmem>>, vector<3x1xf32>
    %cst = arith.constant dense<0.000000e+00> : vector<32x128xf32>
    %6 = tpu.matmul %1, %0, %cst {dimension_numbers = #tpu.dot_dimension_numbers<[1], [0], [0], [1], [0, 0, 1, 1], [], []>} : vector<32x4xf32>, vector<4x128xf32>, vector<32x128xf32> -> vector<32x128xf32>
    %7 = vector.broadcast %4 : vector<32x1xf32> to vector<32x128xf32>
    %8 = arith.addf %6, %7 : vector<32x128xf32>
    %9 = math.tanh %8 : vector<32x128xf32>
    %10 = arith.mulf %9, %9 : vector<32x128xf32>
    %cst_11 = arith.constant 1.000000e+00 : f32
    %11 = vector.broadcast %cst_11 : f32 to vector<32x128xf32>
    %12 = arith.subf %11, %10 : vector<32x128xf32>
    %cst_12 = arith.constant dense<0.000000e+00> : vector<3x128xf32>
    %13 = tpu.matmul %2, %9, %cst_12 {dimension_numbers = #tpu.dot_dimension_numbers<[1], [0], [0], [1], [0, 0, 1, 1], [], []>} : vector<3x32xf32>, vector<32x128xf32>, vector<3x128xf32> -> vector<3x128xf32>
    %14 = vector.broadcast %5 : vector<3x1xf32> to vector<3x128xf32>
    %15 = arith.addf %13, %14 : vector<3x128xf32>
    %c0_13 = arith.constant 0 : index
    %c0_14 = arith.constant 0 : index
    %16 = vector.load %arg8[%c0_13, %c0_14] : memref<3x128xf32, #tpu.memory_space<vmem>>, vector<3x128xf32>
    tpu.vector_store %arg8[%c0_13, %c0_14], %15 {strides = array<i32>} : memref<3x128xf32, #tpu.memory_space<vmem>>, vector<3x128xf32>,
    %cst_15 = arith.constant dense<0.000000e+00> : vector<12x128xf32>
    %17 = tpu.matmul %3, %12, %cst_15 {dimension_numbers = #tpu.dot_dimension_numbers<[1], [0], [0], [1], [0, 0, 1, 1], [], []>} : vector<12x32xf32>, vector<32x128xf32>, vector<12x128xf32> -> vector<12x128xf32>
    %c0_16 = arith.constant 0 : index
    %c0_17 = arith.constant 0 : index
    %18 = vector.load %arg10[%c0_16, %c0_17] : memref<12x128xf32, #tpu.memory_space<vmem>>, vector<12x128xf32>
    tpu.vector_store %arg10[%c0_16, %c0_17], %17 {strides = array<i32>} : memref<12x128xf32, #tpu.memory_space<vmem>>, vector<12x128xf32>,
    %c0_18 = arith.constant 0 : index
    %c0_19 = arith.constant 0 : index
    %19 = vector.load %arg2[%c0_18, %c0_19] : memref<4x128xf32, #tpu.memory_space<vmem>>, vector<4x128xf32>
    %cst_20 = arith.constant dense<0.000000e+00> : vector<32x128xf32>
    %20 = tpu.matmul %1, %19, %cst_20 {dimension_numbers = #tpu.dot_dimension_numbers<[1], [0], [0], [1], [0, 0, 1, 1], [], []>} : vector<32x4xf32>, vector<4x128xf32>, vector<32x128xf32> -> vector<32x128xf32>
    %21 = arith.mulf %12, %20 : vector<32x128xf32>
    %cst_21 = arith.constant -2.000000e+00 : f32
    %22 = vector.broadcast %cst_21 : f32 to vector<32x128xf32>
    %23 = arith.mulf %22, %9 : vector<32x128xf32>
    %24 = arith.mulf %23, %21 : vector<32x128xf32>
    %cst_22 = arith.constant dense<0.000000e+00> : vector<3x128xf32>
    %25 = tpu.matmul %2, %21, %cst_22 {dimension_numbers = #tpu.dot_dimension_numbers<[1], [0], [0], [1], [0, 0, 1, 1], [], []>} : vector<3x32xf32>, vector<32x128xf32>, vector<3x128xf32> -> vector<3x128xf32>
    %c0_23 = arith.constant 0 : index
    %c0_24 = arith.constant 0 : index
    %26 = vector.load %arg9[%c0_23, %c0_24] : memref<3x128xf32, #tpu.memory_space<vmem>>, vector<3x128xf32>
    tpu.vector_store %arg9[%c0_23, %c0_24], %25 {strides = array<i32>} : memref<3x128xf32, #tpu.memory_space<vmem>>, vector<3x128xf32>,
    %cst_25 = arith.constant dense<0.000000e+00> : vector<12x128xf32>
    %27 = tpu.matmul %3, %24, %cst_25 {dimension_numbers = #tpu.dot_dimension_numbers<[1], [0], [0], [1], [0, 0, 1, 1], [], []>} : vector<12x32xf32>, vector<32x128xf32>, vector<12x128xf32> -> vector<12x128xf32>
    %c0_26 = arith.constant 0 : index
    %c0_27 = arith.constant 0 : index
    %28 = vector.load %arg11[%c0_26, %c0_27] : memref<12x128xf32, #tpu.memory_space<vmem>>, vector<12x128xf32>
    tpu.vector_store %arg11[%c0_26, %c0_27], %27 {strides = array<i32>} : memref<12x128xf32, #tpu.memory_space<vmem>>, vector<12x128xf32>,
    return
  }
  func.func @transform_0(%arg0: i32) -> (i32, i32) {
    %c0_i32 = arith.constant 0 : i32
    %c0_i32_0 = arith.constant 0 : i32
    return %c0_i32, %arg0 : i32, i32
  }
  func.func @transform_1(%arg0: i32) -> (i32, i32) {
    %c0_i32 = arith.constant 0 : i32
    %c0_i32_0 = arith.constant 0 : i32
    return %c0_i32, %arg0 : i32, i32
  }
  func.func @transform_2(%arg0: i32) -> (i32, i32) {
    %c0_i32 = arith.constant 0 : i32
    %c0_i32_0 = arith.constant 0 : i32
    %c0_i32_1 = arith.constant 0 : i32
    return %c0_i32, %c0_i32_0 : i32, i32
  }
  func.func @transform_3(%arg0: i32) -> (i32, i32) {
    %c0_i32 = arith.constant 0 : i32
    %c0_i32_0 = arith.constant 0 : i32
    %c0_i32_1 = arith.constant 0 : i32
    return %c0_i32, %c0_i32_0 : i32, i32
  }
  func.func @transform_4(%arg0: i32) -> (i32, i32) {
    %c0_i32 = arith.constant 0 : i32
    %c0_i32_0 = arith.constant 0 : i32
    %c0_i32_1 = arith.constant 0 : i32
    return %c0_i32, %c0_i32_0 : i32, i32
  }
  func.func @transform_5(%arg0: i32) -> (i32, i32) {
    %c0_i32 = arith.constant 0 : i32
    %c0_i32_0 = arith.constant 0 : i32
    %c0_i32_1 = arith.constant 0 : i32
    return %c0_i32, %c0_i32_0 : i32, i32
  }
  func.func @transform_6(%arg0: i32) -> (i32, i32) {
    %c0_i32 = arith.constant 0 : i32
    %c0_i32_0 = arith.constant 0 : i32
    %c0_i32_1 = arith.constant 0 : i32
    return %c0_i32, %c0_i32_0 : i32, i32
  }
  func.func @transform_7(%arg0: i32) -> (i32, i32) {
    %c0_i32 = arith.constant 0 : i32
    %c0_i32_0 = arith.constant 0 : i32
    return %c0_i32, %arg0 : i32, i32
  }
  func.func @transform_8(%arg0: i32) -> (i32, i32) {
    %c0_i32 = arith.constant 0 : i32
    %c0_i32_0 = arith.constant 0 : i32
    return %c0_i32, %arg0 : i32, i32
  }
  func.func @transform_9(%arg0: i32) -> (i32, i32) {
    %c0_i32 = arith.constant 0 : i32
    %c0_i32_0 = arith.constant 0 : i32
    return %c0_i32, %arg0 : i32, i32
  }
  func.func @transform_10(%arg0: i32) -> (i32, i32) {
    %c0_i32 = arith.constant 0 : i32
    %c0_i32_0 = arith.constant 0 : i32
    return %c0_i32, %arg0 : i32, i32
  }
}

</mosaic_0001>

<bundles_post_ra>
// kernel: taskmap_forward.1
= control target key start
LH: loop header
LB: loop body
LE: loop exit
PB: predicated region body
PF: predicated region fallthrough
CT: control target
= control target key end

     0   :  { %vm76_vm0 = vcmask 1043456   ;;  %vm63_vm1 = vcmask 31744   ;;  %v317_v2 = vmov 0   ;;  %vm126_vm2 = vcmask 261120   ;;  %s447_s0 = inlined_call_operand.vmem [shape: f32[4,128], index: 0, kind: input, shape index: {}]   ;;  %s448_s2 = inlined_call_operand.vmem [shape: f32[32,4], index: 2, kind: input, shape index: {}]   ;;  %s449_s5 = inlined_call_operand.vmem [shape: f32[32,1], index: 5, kind: input, shape index: {}]   ;;  %s450_s1 = inlined_call_operand.vmem [shape: f32[4,128], index: 1, kind: input, shape index: {}]   ;;  %s451_s6 = inlined_call_operand.vmem [shape: f32[3,1], index: 6, kind: input, shape index: {}]   ;;  %s452_s3 = inlined_call_operand.vmem [shape: f32[3,32], index: 3, kind: input, shape index: {}]   ;;  %s453_s4 = inlined_call_operand.vmem [shape: f32[12,32], index: 4, kind: input, shape index: {}]   ;;  %s454_s8 = inlined_call_operand.vmem [shape: f32[3,128], index: 8, kind: output, shape index: {1}]   ;;  %s455_s7 = inlined_call_operand.vmem [shape: f32[3,128], index: 7, kind: output, shape index: {0}]   ;;  %s456_s9 = inlined_call_operand.vmem [shape: f32[12,128], index: 9, kind: output, shape index: {2}]   ;;  %s457_s10 = inlined_call_operand.vmem [shape: f32[12,128], index: 10, kind: output, shape index: {3}]  }
   0x1   :  { %v30_v0 = vld [vmem:[%s447_s0] sm:$0xf]  ;;  %307 = vset.pattern.permute.xlu1 %v317_v2  ;;  %v39_v3 = vld [vmem:[%s449_s5 + $0x8] sm:$0xff]  ;;  %306 = vset.pattern.permute.xlu0 %v317_v2  ;;  %v41_v5 = vld [vmem:[%s449_s5 + $0x18] sm:$0xff] }
   0x2   :  { %v31_v1 = vld [vmem:[%s448_s2] sm:$0xff]  ;;  %289 = vmatpush.msk.msra.mxu0 %vm76_vm0, %v30_v0  ;;  %50 = vperm.xlu1 %307, %v39_v3   ;;  %v32_v7 = vld [vmem:[%s448_s2 + $0x8] sm:$0xff]  ;;  %v40_v8 = vld [vmem:[%s449_s5 + $0x10] sm:$0xff] }
   0x3   :  { %v182_v4 = vld [vmem:[%s450_s1] sm:$0xf]  ;;  %290 = vmatmul.msk.f32.vlgmr.msra.gmra.mxu0 %vm63_vm1, %v31_v1  ;;  %60 = vperm.xlu0 %306, %v41_v5   ;;  %v33_v9 = vld [vmem:[%s448_s2 + $0x10] sm:$0xff]  ;;  %v34_v10 = vld [vmem:[%s448_s2 + $0x18] sm:$0xff] }
   0x4   :  { %297 = vmatpush.msk.msra.mxu3 %vm76_vm0, %v182_v4  ;;  %308 = vset.pattern.permute.xlu2 %v317_v2  ;;  %v38_v6 = vld [vmem:[%s449_s5] sm:$0xff]  ;;  %v37_v54 = vld [vmem:[%s453_s4 + $0x8] sm:$0xf] }
   0x5   :  { %298 = vmatmul.msk.f32.vlgmr.msra.gmra.mxu3 %vm63_vm1, %v31_v1  ;;  %v42_v28 = vld [vmem:[%s451_s6] sm:$0x7] }
   0x6   :  { %123 = vperm.xlu2 %308, %v42_v28   ;;  %v35_v40 = vld [vmem:[%s452_s3] sm:$0x7] }
   0x7   :  { %v36_v47 = vld [vmem:[%s453_s4] sm:$0xff] }
   0xa   :  { %45 = vperm.xlu1 %307, %v38_v6  }
   0xb   :  { %291 = vmatmul.msk.f32.gmra.mxu0 %vm63_vm1, %v32_v7  ;;  %55 = vperm.xlu0 %306, %v40_v8  }
   0xd   :  { %299 = vmatmul.msk.f32.gmra.mxu3 %vm63_vm1, %v32_v7 }
  0x13   :  { %292 = vmatmul.msk.f32.gmra.mxu0 %vm63_vm1, %v33_v9 }
  0x15   :  { %300 = vmatmul.msk.f32.gmra.mxu3 %vm63_vm1, %v33_v9 }
  0x1b   :  { %293 = vmatmul.msk.f32.gmra.mxu0 %vm63_vm1, %v34_v10 }
  0x1d   :  { %301 = vmatmul.msk.f32.gmra.mxu3 %vm63_vm1, %v34_v10 }
  0x60   :  { %v124_v55 = vpop.permute.xlu2 %123 }
  0x74   :  { %v51_v15 = vpop.permute.xlu1 %50 }
  0x75   :  { %v61_v12 = vpop.permute.xlu0 %60 }
  0x7c   :  { %v46_v19 = vpop.permute.xlu1 %45 }
  0x7d   :  { %v56_v17 = vpop.permute.xlu0 %55 }
  0x80   :  { %v97_v11 = vpop.f32.mrf.mxu0 }
  0x81   :  { %v98_v22 = vadd.f32 %v97_v11, %v46_v19 }
  0x88   :  { %v203_v13 = vpop.f32.mrf.mxu3  ;;  %v100_v14 = vpop.f32.mrf.mxu0 }
  0x89   :  { %v101_v21 = vadd.f32 %v100_v14, %v51_v15 }
  0x90   :  { %v206_v16 = vpop.f32.mrf.mxu3  ;;  %v103_v18 = vpop.f32.mrf.mxu0 }
  0x91   :  { %v104_v20 = vadd.f32 %v103_v18, %v56_v17 }
  0x93   :  { %309 = vtanh.f32 %v104_v20 }
  0x94   :  { %311 = vtanh.f32 %v101_v21 }
  0x95   :  { %313 = vtanh.f32 %v98_v22 }
  0x98   :  { %v106_v23 = vpop.f32.mrf.mxu0  ;;  %v209_v25 = vpop.f32.mrf.mxu3 }
  0x99   :  { %v107_v24 = vadd.f32 %v106_v23, %v61_v12  ;;  %v310_v26 = vpop.eup %309 }
  0x9a   :  { %v312_v27 = vpop.eup %311  ;;  %v115_v30 = vmul.f32 %v310_v26, %v310_v26  ;;  %v221_v48 = vmul.f32 -2.0, %v310_v26 }
  0x9b   :  { %315 = vtanh.f32 %v107_v24  ;;  %v314_v29 = vpop.eup %313  ;;  %v114_v32 = vmul.f32 %v312_v27, %v312_v27  ;;  %v220_v50 = vmul.f32 -2.0, %v312_v27 }
  0x9c   :  { %v113_v35 = vmul.f32 %v314_v29, %v314_v29  ;;  %v119_v36 = vsub.f32 1.0, %v115_v30  ;;  %v219_v52 = vmul.f32 -2.0, %v314_v29 }
  0x9d   :  { %v118_v38 = vsub.f32 1.0, %v114_v32 }
  0x9e   :  { %v117_v41 = vsub.f32 1.0, %v113_v35  ;;  %v217_v42 = vmul.f32 %v209_v25, %v119_v36 }
  0x9f   :  { %v216_v43 = vmul.f32 %v206_v16, %v118_v38 }
  0xa0   :  { %v212_v34 = vpop.f32.mrf.mxu3  ;;  %v215_v44 = vmul.f32 %v203_v13, %v117_v41  ;;  %v225_v49 = vmul.f32 %v221_v48, %v217_v42 }
  0xa1   :  { %v316_v31 = vpop.eup %315  ;;  %v224_v51 = vmul.f32 %v220_v50, %v216_v43 }
  0xa2   :  { %142 = vmatpush.msra.mxu2 %v316_v31  ;;  %v116_v33 = vmul.f32 %v316_v31, %v316_v31  ;;  %v222_v45 = vmul.f32 -2.0, %v316_v31  ;;  %v223_v53 = vmul.f32 %v219_v52, %v215_v44 }
  0xa4   :  { %143 = vmatpush.msra.mxu2 %v310_v26  ;;  %v120_v37 = vsub.f32 1.0, %v116_v33 }
  0xa6   :  { %v218_v39 = vmul.f32 %v212_v34, %v120_v37  ;;  %144 = vmatpush.msra.mxu2 %v312_v27 }
  0xa8   :  { %145 = vmatpush.msra.mxu2 %v314_v29  ;;  %239 = vmatpush.msra.mxu1 %v218_v39  ;;  %v226_v46 = vmul.f32 %v222_v45, %v218_v39 }
  0xa9   :  { %294 = vmatmul.msk.f32.vlgmr.msra.gmra.mxu2 %vm126_vm2, %v35_v40 }
  0xaa   :  { %169 = vmatpush.msrb.mxu2 %v120_v37  ;;  %240 = vmatpush.msra.mxu1 %v217_v42 }
  0xac   :  { %170 = vmatpush.msrb.mxu2 %v119_v36  ;;  %241 = vmatpush.msra.mxu1 %v216_v43 }
  0xae   :  { %171 = vmatpush.msrb.mxu2 %v118_v38  ;;  %242 = vmatpush.msra.mxu1 %v215_v44 }
  0xaf   :  { %302 = vmatmul.msk.f32.vlgmr.msra.gmra.mxu1 %vm126_vm2, %v35_v40 }
  0xb0   :  { %172 = vmatpush.msrb.mxu2 %v117_v41  ;;  %260 = vmatpush.msrb.mxu1 %v226_v46 }
  0xb1   :  { %295 = vmatmul.msk.f32.vlgmr.msrb.gmra.mxu2 %vm126_vm2, %v36_v47 }
  0xb2   :  { %261 = vmatpush.msrb.mxu1 %v225_v49 }
  0xb4   :  { %262 = vmatpush.msrb.mxu1 %v224_v51 }
  0xb6   :  { %263 = vmatpush.msrb.mxu1 %v223_v53 }
  0xb7   :  { %303 = vmatmul.msk.f32.vlgmr.msrb.gmra.mxu1 %vm126_vm2, %v36_v47 }
  0xb9   :  { %296 = vmatmul.msk.f32.gmra.mxu2 %vm126_vm2, %v37_v54 }
  0xbf   :  { %304 = vmatmul.msk.f32.gmra.mxu1 %vm126_vm2, %v37_v54 }
 0x12c   :  { %v147_v56 = vpop.f32.mrf.mxu2  ;;  %v244_v57 = vpop.f32.mrf.mxu1 }
 0x12d   :  { %v148_v58 = vadd.f32 %v147_v56, %v124_v55  ;;  %247 = vst [vmem:[%s454_s8] sm:$0x7] %v244_v57 }
 0x12f   :  { %150 = vst [vmem:[%s455_s7] sm:$0x7] %v148_v58 }
 0x134   :  { %v174_v59 = vpop.f32.mrf.mxu2  ;;  %v265_v60 = vpop.f32.mrf.mxu1 }
 0x135   :  { %180 = vst [vmem:[%s456_s9] sm:$0xff] %v174_v59 }
 0x136   :  { %271 = vst [vmem:[%s457_s10] sm:$0xff] %v265_v60 }
 0x13c   :  { %v177_v61 = vpop.f32.mrf.mxu2  ;;  %v268_v62 = vpop.f32.mrf.mxu1 }
 0x13d   :  { %181 = vst [vmem:[%s456_s9 + $0x8] sm:$0xf] %v177_v61 }
 0x13e   :  { %272 = vst [vmem:[%s457_s10 + $0x8] sm:$0xf] %v268_v62 }

</bundles_post_ra>
